<compile_context>
chip_gen: v6e
topology: v6e:2x2x1
jax: 0.10.0
libtpu: 0.0.40
codegen_flags: <defaults>
</compile_context>

<pallas_src>
import jax
import jax.numpy as jnp
from jax.experimental import pallas as pl
from jax.experimental.pallas import tpu as pltpu


# VMEM budget reserved for the double-buffered input + output row tiles
# (2 arrays x 2 buffers = 4 tiles).  Kept well under v7x's 64 MiB per-TC VMEM
# so the same tiling works on v5e / v6e / v7x; the rest of the 48 MiB scoped
# limit is headroom for the f32 intermediates inside the kernel body.
_TILE_IO_VMEM_BUDGET = 24 * 1024 * 1024
_VMEM_LIMIT_BYTES = 48 * 1024 * 1024


def _round_up(n: int, m: int) -> int:
    return ((n + m - 1) // m) * m


def _rmsnorm_kernel(x_ref, w_ref, o_ref, *, eps: float, inv_dim: float):
    # x_ref: (tile_rows, dim), w_ref: (1, dim), o_ref: (tile_rows, dim)
    x = x_ref[...].astype(jnp.float32)
    w = w_ref[...].astype(jnp.float32)                  # (1, dim) broadcasts over rows
    # sum * (1/dim) instead of mean: multiply instead of divide, constant baked in.
    ms = jnp.sum(x * x, axis=-1, keepdims=True) * inv_dim   # (tile_rows, 1)
    inv = jax.lax.rsqrt(ms + eps)
    y = x * inv * w
    o_ref[...] = y.astype(o_ref.dtype)


def _pick_tile_rows(rows: int, dim: int, dtype_bytes: int) -> int:
    # 4 resident IO tiles (in + out, each double-buffered) must fit the budget.
    rows_fit = _TILE_IO_VMEM_BUDGET // max(1, 4 * dim * dtype_bytes)
    tile_rows = max(8, (rows_fit // 8) * 8)
    # Never make the block (much) larger than the array itself: clamp to the
    # row count rounded up to the sublane multiple (Pallas masks the tail).
    tile_rows = min(tile_rows, _round_up(rows, 8))
    return tile_rows


def rms_norm(x: jax.Array, weight: jax.Array, eps: float = 1e-6) -> jax.Array:
    """RMSNorm over the last axis of x, matching F.rms_norm(x, (dim,), weight, eps)."""
    dim = x.shape[-1]
    assert weight.shape == (dim,)
    lead = x.shape[:-1]
    rows = 1
    for d in lead:
        rows *= d
    x2d = x.reshape(rows, dim)
    w2d = weight.reshape(1, dim)

    dtype_bytes = jnp.dtype(x.dtype).itemsize
    tile_rows = _pick_tile_rows(rows, dim, dtype_bytes)

    # Ragged last block handled by Pallas: no padding copy, no output slice.
    grid = (pl.cdiv(rows, tile_rows),)

    # TODO(synk): for dim < 128 (lane-sparse last axis) a lane-dense repack of
    # several logical rows into one 128-lane row would avoid masked partial
    # stores; irrelevant for typical hidden sizes that are multiples of 128.
    kernel = lambda x_ref, w_ref, o_ref: _rmsnorm_kernel(
        x_ref, w_ref, o_ref, eps=eps, inv_dim=1.0 / dim)

    out = pl.pallas_call(
        kernel,
        out_shape=jax.ShapeDtypeStruct((rows, dim), x.dtype),
        grid_spec=pltpu.PrefetchScalarGridSpec(
            num_scalar_prefetch=0,
            grid=grid,
            in_specs=[
                pl.BlockSpec((tile_rows, dim), lambda i: (i, 0)),
                pl.BlockSpec((1, dim), lambda i: (0, 0)),
            ],
            out_specs=pl.BlockSpec((tile_rows, dim), lambda i: (i, 0)),
        ),
        compiler_params=pltpu.CompilerParams(
            dimension_semantics=("parallel",),
            vmem_limit_bytes=_VMEM_LIMIT_BYTES,
        ),
    )(x2d, w2d)

    return out.reshape(*lead, dim)


def _reference_rms_norm(x, weight, eps):
    xf = x.astype(jnp.float32)
    ms = jnp.mean(xf * xf, axis=-1, keepdims=True)
    return (xf * jax.lax.rsqrt(ms + eps) * weight.astype(jnp.float32)).astype(x.dtype)


if __name__ == "__main__":
    key = jax.random.PRNGKey(0)
    batch, seq, hidden = 2, 8, 32

    x = jax.random.normal(key, (batch, seq, hidden), dtype=jnp.float32)
    # Deterministic parameter init: RMSNorm.__init__ uses torch.ones(dim).
    weight = jnp.ones((hidden,), dtype=jnp.float32)

    y = rms_norm(x, weight, eps=1e-6)
    y = jax.block_until_ready(y)

    y_ref = _reference_rms_norm(x, weight, 1e-6)
    assert y.shape == x.shape
    assert jnp.allclose(y, y_ref, atol=1e-5, rtol=1e-5), "mismatch vs reference"

    print("KERNEL_OK")
</pallas_src>

<mosaic_0001>
module attributes {stable_mosaic.version = 11 : i64} {
  func.func @_lambda_(%arg0: i32, %arg1: memref<16x32xf32, #tpu.memory_space<vmem>>, %arg2: memref<1x32xf32, #tpu.memory_space<vmem>>, %arg3: memref<16x32xf32, #tpu.memory_space<vmem>>) attributes {dimension_semantics = [#tpu.dimension_semantics<parallel>], iteration_bounds = array<i64: 1>, scalar_prefetch = 0 : i64, scratch_operands = 0 : i64, tpu.core_type = #tpu.core_type<tc>, window_params = [{transform_indices = @transform_0, window_bounds = array<i64: 16, 32>}, {pipeline_mode = #tpu.pipeline_mode<synchronous>, transform_indices = @transform_1, window_bounds = array<i64: 1, 32>}, {transform_indices = @transform_2, window_bounds = array<i64: 16, 32>}]} {
    %c0 = arith.constant 0 : index
    %c0_0 = arith.constant 0 : index
    %0 = vector.load %arg1[%c0, %c0_0] : memref<16x32xf32, #tpu.memory_space<vmem>>, vector<16x32xf32>
    %c0_1 = arith.constant 0 : index
    %c0_2 = arith.constant 0 : index
    %1 = vector.load %arg2[%c0_1, %c0_2] : memref<1x32xf32, #tpu.memory_space<vmem>>, vector<1x32xf32>
    %2 = arith.mulf %0, %0 : vector<16x32xf32>
    %cst = arith.constant dense<0.000000e+00> : vector<16xf32>
    %3 = vector.multi_reduction <add>, %2, %cst [1] : vector<16x32xf32> to vector<16xf32>
    %4 = vector.shape_cast %3 : vector<16xf32> to vector<16x1xf32>
    %cst_3 = arith.constant 3.125000e-02 : f32
    %5 = vector.broadcast %cst_3 : f32 to vector<16x1xf32>
    %6 = arith.mulf %4, %5 : vector<16x1xf32>
    %cst_4 = arith.constant 9.99999997E-7 : f32
    %7 = vector.broadcast %cst_4 : f32 to vector<16x1xf32>
    %8 = arith.addf %6, %7 : vector<16x1xf32>
    %9 = math.rsqrt %8 : vector<16x1xf32>
    %10 = vector.broadcast %9 : vector<16x1xf32> to vector<16x32xf32>
    %11 = arith.mulf %0, %10 : vector<16x32xf32>
    %12 = vector.broadcast %1 : vector<1x32xf32> to vector<16x32xf32>
    %13 = arith.mulf %11, %12 : vector<16x32xf32>
    %c0_5 = arith.constant 0 : index
    %c0_6 = arith.constant 0 : index
    %14 = vector.load %arg3[%c0_5, %c0_6] : memref<16x32xf32, #tpu.memory_space<vmem>>, vector<16x32xf32>
    tpu.vector_store %arg3[%c0_5, %c0_6], %13 {strides = array<i32>} : memref<16x32xf32, #tpu.memory_space<vmem>>, vector<16x32xf32>,
    return
  }
  func.func @transform_0(%arg0: i32) -> (i32, i32) {
    %c0_i32 = arith.constant 0 : i32
    %c0_i32_0 = arith.constant 0 : i32
    return %arg0, %c0_i32 : i32, i32
  }
  func.func @transform_1(%arg0: i32) -> (i32, i32) {
    %c0_i32 = arith.constant 0 : i32
    %c0_i32_0 = arith.constant 0 : i32
    %c0_i32_1 = arith.constant 0 : i32
    return %c0_i32, %c0_i32_0 : i32, i32
  }
  func.func @transform_2(%arg0: i32) -> (i32, i32) {
    %c0_i32 = arith.constant 0 : i32
    %c0_i32_0 = arith.constant 0 : i32
    return %arg0, %c0_i32 : i32, i32
  }
}

</mosaic_0001>

<bundles_post_ra>
// kernel: tpu_custom_call.1
= control target key start
LH: loop header
LB: loop body
LE: loop exit
PB: predicated region body
PF: predicated region fallthrough
CT: control target
= control target key end

     0   :  { %7 = vsyncpa [#allocation3], 0  ;;  %s164_s0 = inlined_call_operand.hbm [shape: f32[16,32], index: 0, kind: input, shape index: {}]   ;;  %s165_s1 = inlined_call_operand.vmem [shape: f32[1,32], index: 1, kind: input, shape index: {}]   ;;  %s166_s2 = inlined_call_operand.hbm [shape: f32[16,32], index: 2, kind: output, shape index: {}]  }
   0x1   :  { %8 = vsyncpa [#allocation4], 0  ;;  %s126_s9 = smov [#allocation2]  }
   0x2   :  { %s14_s10 = sshll.u32 %s126_s9, 4  ;;  %s15_s10 = int_to_ptr.vmem [resolvable:$true] %s14_s10 }
   0x3   :  { %s90_s11 = scalar_lea.vmem %s15_s10, 256  ;;  %p95_p1 = scmp.lt.s32.totalorder %s15_s10, %s15_s10 }
   0x4   :  { %p91_p0 = scmp.ne.s32.totalorder %s15_s10, %s90_s11  ;;  %p96_p2 = scmp.lt.s32.totalorder %s90_s11, %s90_s11 }
   0x6   :  { %p97_p3 = por %p96_p2, %p95_p1 }
   0x8   :  { %p98_p4 = pnand %p97_p3, %p91_p0 }
   0xa   :  { %101 = shalt.err (!%p98_p4)
}
   0xb   :  { %s127_s12 = smov 128   ;;  %s128_s13 = smov 8  }
   0xc   :  { %20 = dma.hbm_to_vmem [thread:$0]  %s164_s0, 256, %s15_s10, [#allocation3], %s127_s12, %s127_s12, %s128_s13  }
   0xd   :  { %122 = dma.done.wait [#allocation3], 256  }
   0xe   :  { %123 = vsyncadd [#allocation3], 4294967040  ;;  %v26_v0 = vld [vmem:[#allocation2] sm:$0xff]  ;;  %vm31_vm0 = vcmask 261120   ;;  %v27_v1 = vld [vmem:[#allocation2 + $0x8] sm:$0xff]  ;;  %s129_s17 = smov [#allocation5]  }
   0xf   :  { %v29_v2 = vmul.f32 %v26_v0, %v26_v0  ;;  %v30_v3 = vmul.f32 %v27_v1, %v27_v1  ;;  %v73_v13 = vld [vmem:[%s165_s1] ss:$0 sm:$0xff]  ;;  %s61_s18 = sshll.u32 %s129_s17, 4  ;;  %s62_s18 = int_to_ptr.vmem [resolvable:$true] %s61_s18 }
  0x10   :  { %s102_s19 = scalar_lea.vmem %s62_s18, 256  ;;  %p107_p6 = scmp.lt.s32.totalorder %s62_s18, %s62_s18 }
  0x11   :  { %v32_v4 = vsel %vm31_vm0, %v29_v2, 0.0  ;;  %v35_v5 = vsel %vm31_vm0, %v30_v3, 0.0  ;;  %p103_p5 = scmp.ne.s32.totalorder %s62_s18, %s102_s19  ;;  %p108_p7 = scmp.lt.s32.totalorder %s102_s19, %s102_s19 }
  0x12   :  { %33 = vadd.xlane.f32.xlu0 %v32_v4 }
  0x13   :  { %p109_p8 = por %p108_p7, %p107_p6 }
  0x15   :  { %p110_p9 = pnand %p109_p8, %p103_p5 }
  0x16   :  { %36 = vadd.xlane.f32.xlu0 %v35_v5 }
  0x9b   :  { %v34_v6 = vpop.xlane.xlu0 %33 }
  0x9c   :  { %v38_v7 = vmul.f32 0.03125, %v34_v6 }
  0x9e   :  { %v40_v8 = vadd.f32 1e-06, %v38_v7 }
  0x9f   :  { %v37_v9 = vpop.xlane.xlu0 %36 }
  0xa0   :  { %78 = vrsqrt.f32 %v40_v8  ;;  %v39_v10 = vmul.f32 0.03125, %v37_v9 }
  0xa2   :  { %v41_v11 = vadd.f32 1e-06, %v39_v10 }
  0xa4   :  { %80 = vrsqrt.f32 %v41_v11 }
  0xad   :  { %v79_v12 = vpop.eup %78 }
  0xae   :  { %v44_v14 = vmul.f32 %v79_v12, %v26_v0 }
  0xb0   :  { %v52_v15 = vmul.f32 %v73_v13, %v44_v14 }
  0xb1   :  { %v81_v16 = vpop.eup %80 }
  0xb2   :  { %v45_v17 = vmul.f32 %v81_v16, %v27_v1  ;;  %54 = vst.msk [vmem:[#allocation5] sm:$0xff] %vm31_vm0, %v52_v15 }
  0xb4   :  { %v53_v18 = vmul.f32 %v73_v13, %v45_v17 }
  0xb6   :  { %55 = vst.msk [vmem:[#allocation5 + $0x8] sm:$0xff] %vm31_vm0, %v53_v18 }
  0xb7   :  { %113 = shalt.err (!%p110_p9)
}
  0xb8   :  { %67 = dma.vmem_to_hbm [thread:$0]  %s62_s18, 256, %s166_s2, [#allocation4], %s127_s12, %s127_s12, %s128_s13  }
  0xb9   :  { %124 = dma.done.wait [#allocation4], 256  }
  0xba   :  { %125 = vsyncadd [#allocation4], 4294967040 }
  0xbb   :  { %71 = vsyncpa [#allocation3], 1 }
  0xbc   :  { %72 = vsyncpa [#allocation4], 1 }

</bundles_post_ra>
